<compile_context>
chip_gen: v6e
topology: v6e:2x2x1
jax: 0.10.0
libtpu: 0.0.40
codegen_flags: <defaults>
</compile_context>

<pallas_src>
import math
from functools import partial

import jax
import jax.numpy as jnp
from jax.experimental import pallas as pl
from jax.experimental.pallas import tpu as pltpu

LANE = 128
SUBLANE = 8


def _round_up(x: int, m: int) -> int:
    return (x + m - 1) // m * m


def _make_controller_kernel(std: float):
    log_std = math.log(std)
    log_sqrt_2pi = 0.5 * math.log(2.0 * math.pi)
    inv_2var = 1.0 / (2.0 * std * std)

    def controller_kernel(h_ref, w1_ref, b1_ref, w2_ref, eps_ref, b2_ref, out_ref):
        # ---- fc1 + relu on the MXU: (nembp, ninp) @ (ninp, tB) -> (nembp, tB)
        feat = jnp.dot(w1_ref[...], h_ref[...],
                       preferred_element_type=jnp.float32) + b1_ref[...]
        feat = jnp.maximum(feat, 0.0)

        # ---- fc2 on the VPU (multiply) + sublane reduce (XLU); avoids a second
        #      MXU weight push for a 10-wide contraction.
        mu = jnp.tanh(jnp.sum(feat * w2_ref[...], axis=0, keepdims=True)
                      + b2_ref[0, 0])                                  # (1, tB)

        # ---- reparameterized sample (detached in torch), clamped to [-1, 1]
        l_t = jnp.clip(mu + std * eps_ref[...], -1.0, 1.0)

        # ---- Normal(mu, std).log_prob(l_t)  (computed on the clamped sample,
        #      exactly as the PyTorch reference does)
        diff = l_t - mu
        log_pi = -(diff * diff) * inv_2var - log_std - log_sqrt_2pi

        # TODO(synk): PyTorch's runtime NaN assertion (`assert 2 == 3`) has no
        # clean in-kernel equivalent; omitted.

        # ---- single lane-dense packed output: row 0 = log_pi, row 1 = l_t
        out_ref[0:1, :] = log_pi
        out_ref[1:2, :] = l_t

    return controller_kernel


@partial(jax.jit, static_argnames=("std",))
def controller_forward(h_t, w1, b1, w2, b2, eps, std: float):
    """h_t: (1, B, ninp) f32; w1: (ninp, nemb); b1: (1, nemb); w2: (nemb, 1);
    b2: (1, 1); eps: (B, 1).  Returns (log_pi, l_t), each (B, 1) float32."""
    h = jnp.squeeze(h_t, axis=0)                     # (B, ninp)
    B, ninp = h.shape
    nemb = w1.shape[1]

    # ----- layout prep: batch goes on the lane axis, hidden on sublanes -----
    nembp = _round_up(nemb, SUBLANE)                 # 10 -> 16
    tB = 512 if B >= 512 else _round_up(B, LANE)     # lane-block, multiple of 128
    Bp = _round_up(B, tB)

    h_T = jnp.zeros((ninp, Bp), jnp.float32).at[:, :B].set(h.T)
    w1_T = jnp.zeros((nembp, ninp), jnp.float32).at[:nemb, :].set(w1.T)
    b1_c = jnp.zeros((nembp, 1), jnp.float32).at[:nemb, 0].set(b1[0])
    w2_c = jnp.zeros((nembp, 1), jnp.float32).at[:nemb, :].set(w2)
    eps_T = jnp.zeros((1, Bp), jnp.float32).at[0, :B].set(eps[:, 0])
    b2_s = b2.astype(jnp.float32)

    kernel = _make_controller_kernel(std)
    grid = (Bp // tB,)

    packed = pl.pallas_call(
        kernel,
        out_shape=jax.ShapeDtypeStruct((2, Bp), jnp.float32),
        grid_spec=pltpu.PrefetchScalarGridSpec(
            num_scalar_prefetch=0,
            grid=grid,
            in_specs=[
                pl.BlockSpec((ninp, tB), lambda i: (0, i)),        # h   (streamed)
                pl.BlockSpec((nembp, ninp), lambda i: (0, 0)),     # w1  (resident)
                pl.BlockSpec((nembp, 1), lambda i: (0, 0)),        # b1  (resident)
                pl.BlockSpec((nembp, 1), lambda i: (0, 0)),        # w2  (resident)
                pl.BlockSpec((1, tB), lambda i: (0, i)),           # eps (streamed)
                pl.BlockSpec(memory_space=pltpu.MemorySpace.SMEM), # b2  scalar
            ],
            out_specs=pl.BlockSpec((2, tB), lambda i: (0, i)),
        ),
        compiler_params=pltpu.CompilerParams(
            dimension_semantics=("parallel",)),      # v7x: shard batch over 2 TCs
    )(h_T, w1_T, b1_c, w2_c, eps_T, b2_s)

    log_pi = packed[0, :B].reshape(B, 1)
    l_t = packed[1, :B].reshape(B, 1)
    return log_pi, l_t


def init_controller_params(key, ninp: int, nemb: int = 10):
    """Deterministic init matching nn.Linear default (uniform +/- 1/sqrt(fan_in)).
    Weights returned in (in, out) layout."""
    k1, k2, k3, k4 = jax.random.split(key, 4)
    bound1 = 1.0 / math.sqrt(ninp)
    bound2 = 1.0 / math.sqrt(nemb)
    w1 = jax.random.uniform(k1, (ninp, nemb), jnp.float32, -bound1, bound1)
    b1 = jax.random.uniform(k2, (1, nemb), jnp.float32, -bound1, bound1)
    w2 = jax.random.uniform(k3, (nemb, 1), jnp.float32, -bound2, bound2)
    b2 = jax.random.uniform(k4, (1, 1), jnp.float32, -bound2, bound2)
    return w1, b1, w2, b2


if __name__ == "__main__":
    key = jax.random.PRNGKey(0)
    k_h, k_p, k_eps = jax.random.split(key, 3)

    B, NINP, STD = 8, 32, 0.1

    h_t = jax.random.normal(k_h, (1, B, NINP), jnp.float32)   # (seq=1, B, ninp)
    w1, b1, w2, b2 = init_controller_params(k_p, NINP)
    eps = jax.random.normal(k_eps, (B, 1), jnp.float32)       # reparam noise

    log_pi, l_t = controller_forward(h_t, w1, b1, w2, b2, eps, STD)
    jax.block_until_ready((log_pi, l_t))

    # pure-JAX reference check
    h = jnp.squeeze(h_t, 0)
    feat_r = jnp.maximum(h @ w1 + b1, 0.0)
    mu_r = jnp.tanh(feat_r @ w2 + b2)
    lt_r = jnp.clip(mu_r + STD * eps, -1.0, 1.0)
    lp_r = (-((lt_r - mu_r) ** 2) / (2.0 * STD * STD)
            - math.log(STD) - 0.5 * math.log(2.0 * math.pi))

    assert log_pi.shape == (B, 1) and l_t.shape == (B, 1)
    assert bool(jnp.all(jnp.abs(l_t) <= 1.0))
    assert not bool(jnp.any(jnp.isnan(log_pi)))
    assert bool(jnp.allclose(l_t, lt_r, atol=1e-5))
    assert bool(jnp.allclose(log_pi, lp_r, atol=1e-4))

    print("KERNEL_OK")
</pallas_src>

<mosaic_0001>
module attributes {stable_mosaic.version = 11 : i64} {
  func.func @controller_kernel(%arg0: i32, %arg1: memref<32x128xf32, #tpu.memory_space<vmem>>, %arg2: memref<16x32xf32, #tpu.memory_space<vmem>>, %arg3: memref<16x1xf32, #tpu.memory_space<vmem>>, %arg4: memref<16x1xf32, #tpu.memory_space<vmem>>, %arg5: memref<1x128xf32, #tpu.memory_space<vmem>>, %arg6: memref<1x1xf32, #tpu.memory_space<smem>>, %arg7: memref<2x128xf32, #tpu.memory_space<vmem>>) attributes {dimension_semantics = [#tpu.dimension_semantics<parallel>], iteration_bounds = array<i64: 1>, scalar_prefetch = 0 : i64, scratch_operands = 0 : i64, tpu.core_type = #tpu.core_type<tc>, window_params = [{transform_indices = @transform_0, window_bounds = array<i64: 32, 128>}, {pipeline_mode = #tpu.pipeline_mode<synchronous>, transform_indices = @transform_1, window_bounds = array<i64: 16, 32>}, {pipeline_mode = #tpu.pipeline_mode<synchronous>, transform_indices = @transform_2, window_bounds = array<i64: 16, 1>}, {pipeline_mode = #tpu.pipeline_mode<synchronous>, transform_indices = @transform_3, window_bounds = array<i64: 16, 1>}, {transform_indices = @transform_4, window_bounds = array<i64: 1, 128>}, {transform_indices = @transform_5, window_bounds = array<i64: 1, 1>}, {transform_indices = @transform_6, window_bounds = array<i64: 2, 128>}]} {
    %c0 = arith.constant 0 : index
    %c0_0 = arith.constant 0 : index
    %0 = vector.load %arg2[%c0, %c0_0] : memref<16x32xf32, #tpu.memory_space<vmem>>, vector<16x32xf32>
    %c0_1 = arith.constant 0 : index
    %c0_2 = arith.constant 0 : index
    %1 = vector.load %arg1[%c0_1, %c0_2] : memref<32x128xf32, #tpu.memory_space<vmem>>, vector<32x128xf32>
    %cst = arith.constant dense<0.000000e+00> : vector<16x128xf32>
    %2 = tpu.matmul %0, %1, %cst {dimension_numbers = #tpu.dot_dimension_numbers<[1], [0], [0], [1], [0, 0, 1, 1], [], []>} : vector<16x32xf32>, vector<32x128xf32>, vector<16x128xf32> -> vector<16x128xf32>
    %c0_3 = arith.constant 0 : index
    %c0_4 = arith.constant 0 : index
    %3 = vector.load %arg3[%c0_3, %c0_4] : memref<16x1xf32, #tpu.memory_space<vmem>>, vector<16x1xf32>
    %4 = vector.broadcast %3 : vector<16x1xf32> to vector<16x128xf32>
    %5 = arith.addf %2, %4 : vector<16x128xf32>
    %cst_5 = arith.constant 0.000000e+00 : f32
    %6 = vector.broadcast %cst_5 : f32 to vector<16x128xf32>
    %7 = arith.maximumf %5, %6 : vector<16x128xf32>
    %c0_6 = arith.constant 0 : index
    %c0_7 = arith.constant 0 : index
    %8 = vector.load %arg4[%c0_6, %c0_7] : memref<16x1xf32, #tpu.memory_space<vmem>>, vector<16x1xf32>
    %9 = vector.broadcast %8 : vector<16x1xf32> to vector<16x128xf32>
    %10 = arith.mulf %7, %9 : vector<16x128xf32>
    %cst_8 = arith.constant dense<0.000000e+00> : vector<128xf32>
    %11 = vector.multi_reduction <add>, %10, %cst_8 [0] : vector<16x128xf32> to vector<128xf32>
    %12 = vector.shape_cast %11 : vector<128xf32> to vector<1x128xf32>
    %c0_9 = arith.constant 0 : index
    %c0_10 = arith.constant 0 : index
    %13 = memref.load %arg6[%c0_9, %c0_10] : memref<1x1xf32, #tpu.memory_space<smem>>
    %14 = vector.broadcast %13 : f32 to vector<1x128xf32>
    %15 = arith.addf %12, %14 : vector<1x128xf32>
    %16 = math.tanh %15 : vector<1x128xf32>
    %c0_11 = arith.constant 0 : index
    %c0_12 = arith.constant 0 : index
    %17 = vector.load %arg5[%c0_11, %c0_12] : memref<1x128xf32, #tpu.memory_space<vmem>>, vector<1x128xf32>
    %cst_13 = arith.constant 1.000000e-01 : f32
    %18 = vector.broadcast %cst_13 : f32 to vector<1x128xf32>
    %19 = arith.mulf %18, %17 : vector<1x128xf32>
    %20 = arith.addf %16, %19 : vector<1x128xf32>
    %cst_14 = arith.constant -1.000000e+00 : f32
    %cst_15 = arith.constant 1.000000e+00 : f32
    %21 = vector.broadcast %cst_14 : f32 to vector<1x128xf32>
    %22 = arith.maximumf %21, %20 : vector<1x128xf32>
    %23 = vector.broadcast %cst_15 : f32 to vector<1x128xf32>
    %24 = arith.minimumf %23, %22 : vector<1x128xf32>
    %25 = arith.subf %24, %16 : vector<1x128xf32>
    %26 = arith.mulf %25, %25 : vector<1x128xf32>
    %cst_16 = arith.constant 0.000000e+00 : f32
    %27 = vector.broadcast %cst_16 : f32 to vector<1x128xf32>
    %28 = arith.subf %27, %26 : vector<1x128xf32>
    %cst_17 = arith.constant 5.000000e+01 : f32
    %29 = vector.broadcast %cst_17 : f32 to vector<1x128xf32>
    %30 = arith.mulf %28, %29 : vector<1x128xf32>
    %cst_18 = arith.constant -2.30258512 : f32
    %31 = vector.broadcast %cst_18 : f32 to vector<1x128xf32>
    %32 = arith.subf %30, %31 : vector<1x128xf32>
    %cst_19 = arith.constant 0.918938517 : f32
    %33 = vector.broadcast %cst_19 : f32 to vector<1x128xf32>
    %34 = arith.subf %32, %33 : vector<1x128xf32>
    %c0_20 = arith.constant 0 : index
    %c0_21 = arith.constant 0 : index
    %35 = vector.load %arg7[%c0_20, %c0_21] : memref<2x128xf32, #tpu.memory_space<vmem>>, vector<1x128xf32>
    tpu.vector_store %arg7[%c0_20, %c0_21], %34 {strides = array<i32>} : memref<2x128xf32, #tpu.memory_space<vmem>>, vector<1x128xf32>,
    %c1 = arith.constant 1 : index
    %c0_22 = arith.constant 0 : index
    %36 = vector.load %arg7[%c1, %c0_22] : memref<2x128xf32, #tpu.memory_space<vmem>>, vector<1x128xf32>
    tpu.vector_store %arg7[%c1, %c0_22], %24 {strides = array<i32>} : memref<2x128xf32, #tpu.memory_space<vmem>>, vector<1x128xf32>,
    return
  }
  func.func @transform_0(%arg0: i32) -> (i32, i32) {
    %c0_i32 = arith.constant 0 : i32
    %c0_i32_0 = arith.constant 0 : i32
    return %c0_i32, %arg0 : i32, i32
  }
  func.func @transform_1(%arg0: i32) -> (i32, i32) {
    %c0_i32 = arith.constant 0 : i32
    %c0_i32_0 = arith.constant 0 : i32
    %c0_i32_1 = arith.constant 0 : i32
    return %c0_i32, %c0_i32_0 : i32, i32
  }
  func.func @transform_2(%arg0: i32) -> (i32, i32) {
    %c0_i32 = arith.constant 0 : i32
    %c0_i32_0 = arith.constant 0 : i32
    %c0_i32_1 = arith.constant 0 : i32
    return %c0_i32, %c0_i32_0 : i32, i32
  }
  func.func @transform_3(%arg0: i32) -> (i32, i32) {
    %c0_i32 = arith.constant 0 : i32
    %c0_i32_0 = arith.constant 0 : i32
    %c0_i32_1 = arith.constant 0 : i32
    return %c0_i32, %c0_i32_0 : i32, i32
  }
  func.func @transform_4(%arg0: i32) -> (i32, i32) {
    %c0_i32 = arith.constant 0 : i32
    %c0_i32_0 = arith.constant 0 : i32
    return %c0_i32, %arg0 : i32, i32
  }
  func.func @transform_5(%arg0: i32) -> (i32, i32) {
    %c0_i32 = arith.constant 0 : i32
    %c0_i32_0 = arith.constant 0 : i32
    %c0_i32_1 = arith.constant 0 : i32
    return %c0_i32, %c0_i32_0 : i32, i32
  }
  func.func @transform_6(%arg0: i32) -> (i32, i32) {
    %c0_i32 = arith.constant 0 : i32
    %c0_i32_0 = arith.constant 0 : i32
    return %c0_i32, %arg0 : i32, i32
  }
}

</mosaic_0001>

<bundles_post_ra>
// kernel: controller_forward.1
= control target key start
LH: loop header
LB: loop body
LE: loop exit
PB: predicated region body
PF: predicated region fallthrough
CT: control target
= control target key end

     0   :  { %vm42_vm0 = vcmask 261120   ;;  %v195_v2 = vmov 0   ;;  %s275_s0 = inlined_call_operand.vmem [shape: f32[32,128], index: 0, kind: input, shape index: {}]   ;;  %s276_s1 = inlined_call_operand.vmem [shape: f32[16,32], index: 1, kind: input, shape index: {}]   ;;  %s277_s2 = inlined_call_operand.vmem [shape: f32[16,1], index: 2, kind: input, shape index: {}]   ;;  %s278_s3 = inlined_call_operand.vmem [shape: f32[16,1], index: 3, kind: input, shape index: {}]   ;;  %s279_s5 = inlined_call_operand.<no memory space> [shape: f32[1,1], index: 5, kind: input, shape index: {}]   ;;  %s280_s4 = inlined_call_operand.vmem [shape: f32[1,128], index: 4, kind: input, shape index: {}]   ;;  %s281_s6 = inlined_call_operand.vmem [shape: f32[2,128], index: 6, kind: output, shape index: {}]  }
   0x1   :  { %v29_v0 = vld [vmem:[%s275_s0 + $0x18] sm:$0xff]  ;;  %v28_v1 = vld [vmem:[%s275_s0 + $0x10] sm:$0xff]  ;;  %191 = vset.pattern.permute.xlu0 %v195_v2  ;;  %192 = vset.pattern.permute.xlu1 %v195_v2  ;;  %v24_v3 = vld [vmem:[%s276_s1] sm:$0xff]  ;;  %v148_v29 = vstv %s279_s5 }
   0x2   :  { %179 = vmatprep.subr.mxu0 %v29_v0  ;;  %v27_v4 = vld [vmem:[%s275_s0 + $0x8] sm:$0xff]  ;;  %187 = vmatprep.mubr.msk.f32.mxu0 %vm42_vm0, %v24_v3  ;;  %v30_v5 = vld [vmem:[%s277_s2] sm:$0xff] }
   0x3   :  { %180 = vmatpush3.msra.mxu0 %v29_v0  ;;  %v126_v6 = vld [vmem:[%s278_s3] sm:$0xff]  ;;  %34 = vperm.xlu0 %191, %v30_v5   ;;  %v31_v8 = vld [vmem:[%s277_s2 + $0x8] sm:$0xff] }
   0x4   :  { %181 = vmatprep.subr.mxu0 %v28_v1  ;;  %v26_v7 = vld [vmem:[%s275_s0] sm:$0xff]  ;;  %130 = vperm.xlu1 %192, %v126_v6   ;;  %v127_v9 = vld [vmem:[%s278_s3 + $0x8] sm:$0xff] }
   0x5   :  { %182 = vmatpush3.msra.mxu0 %v28_v1  ;;  %v25_v10 = vld [vmem:[%s276_s1 + $0x8] sm:$0xff]  ;;  %v151_v32 = vld [vmem:[%s280_s4] sm:$0x1] }
   0x6   :  { %183 = vmatprep.subr.mxu0 %v27_v4  ;;  %v152_v33 = vmul.f32 0.1, %v151_v32 }
   0x7   :  { %184 = vmatpush3.msra.mxu0 %v27_v4  ;;  %39 = vperm.xlu0 %191, %v31_v8  }
   0x8   :  { %185 = vmatprep.subr.mxu0 %v26_v7  ;;  %135 = vperm.xlu1 %192, %v127_v9  }
   0x9   :  { %186 = vmatpush3.msra.mxu0 %v26_v7 }
   0xa   :  { %188 = vmatmul.mubr.msk.f32.vlgmr.msra.gmra.mxu0 %vm42_vm0, %v25_v10 }
  0x7e   :  { %v35_v11 = vpop.permute.xlu0 %34 }
  0x7f   :  { %v131_v12 = vpop.permute.xlu1 %130 }
  0x82   :  { %v40_v13 = vpop.permute.xlu0 %39 }
  0x83   :  { %v136_v20 = vpop.permute.xlu1 %135 }
  0xca   :  { %v189_v14 = vpop.f32.mrf.mxu0 }
  0xcb   :  { %v121_v15 = vadd.f32 %v189_v14, %v40_v13 }
  0xcc   :  { %v115_v16 = vpop.f32.mrf.mxu0 }
  0xcd   :  { %v125_v17 = vmax.f32 %v121_v15, 0.0  ;;  %v116_v18 = vadd.f32 %v115_v16, %v35_v11 }
  0xcf   :  { %v124_v19 = vmax.f32 %v116_v18, 0.0  ;;  %v139_v21 = vmul.f32 %v136_v20, %v125_v17 }
  0xd1   :  { %v138_v22 = vmul.f32 %v131_v12, %v124_v19 }
  0xd3   :  { %v140_v23 = vadd.f32 %v139_v21, %v138_v22 }
  0xd5   :  { %v141_v24 = vrot.slane %v140_v23, 4 }
  0xd7   :  { %v142_v25 = vadd.f32 %v141_v24, %v140_v23 }
  0xd9   :  { %v143_v26 = vrot.slane %v142_v25, 2 }
  0xdb   :  { %v144_v27 = vadd.f32 %v143_v26, %v142_v25 }
  0xdd   :  { %v145_v28 = vrot.slane %v144_v27, 1 }
  0xdf   :  { %v146_v30 = vadd.f32 %v145_v28, %v144_v27 }
  0xe1   :  { %v149_v31 = vadd.f32 %v148_v29, %v146_v30 }
  0xe3   :  { %193 = vtanh.f32 %v149_v31 }
  0xf0   :  { %v194_v34 = vpop.eup %193 }
  0xf1   :  { %v153_v35 = vadd.f32 %v194_v34, %v152_v33 }
  0xf3   :  { %v170_v36 = vclamps-f32 %v153_v35, 1.0 }
  0xf5   :  { %v156_v37 = vsub.f32 %v170_v36, %v194_v34  ;;  %163 = vst [vmem:[%s281_s6 + $0x1] sm:$0x1] %v170_v36 }
  0xf7   :  { %v157_v38 = vmul.f32 %v156_v37, %v156_v37 }
  0xf9   :  { %v158_v39 = vsub.f32 0.0, %v157_v38 }
  0xfb   :  { %v159_v40 = vmul.f32 50.0, %v158_v39 }
  0xfd   :  { %v171_v41 = vadd.f32 2.3025851, %v159_v40 }
  0xff   :  { %v172_v42 = vadd.f32 -0.9189385, %v171_v41 }
 0x101   :  { %162 = vst [vmem:[%s281_s6] sm:$0x1] %v172_v42 }

</bundles_post_ra>
